<compile_context>
chip_gen: v7x
topology: tpu7x:2x2x1
jax: 0.10.0
libtpu: 0.0.40
codegen_flags: <defaults>
</compile_context>

<pallas_src>
import jax
import jax.numpy as jnp
import numpy as np
from jax.experimental import pallas as pl
from jax.experimental.pallas import tpu as pltpu


# ----------------------------------------------------------------------------
# trace-time helpers (NumPy only -> static compile-time constants)
# ----------------------------------------------------------------------------
def _interp_matrix_np(out_size, in_size):
    """(out_size, in_size) align_corners=True bilinear interpolation matrix."""
    scale = 0.0 if out_size == 1 else (in_size - 1) / (out_size - 1)
    src = np.arange(out_size, dtype=np.float64) * scale
    i0 = np.clip(np.floor(src).astype(np.int64), 0, in_size - 1)
    i1 = np.minimum(i0 + 1, in_size - 1)
    f = src - i0
    R = np.zeros((out_size, in_size), np.float32)
    R[np.arange(out_size), i0] += (1.0 - f).astype(np.float32)
    R[np.arange(out_size), i1] += f.astype(np.float32)
    return R


def prepack_unet_up(params, x_cur_shape, x_prev_shape):
    """One-time repack of PyTorch-convention weights into banded GEMM matrices.

    Row-paired lane layouts used everywhere in the kernel
      slab  xcat : (H,   2*Wo*Cin ) lanes = [prev ki=0 (w,c) | prev ki=1 (w,c) | y (ki,w,c)]
      c1         : (H-1, 2*Wo1*Cout) lanes = (ko, w, c)   image rows (2b, 2b+1)
      c2 / out   : (H-2, 2*Wo2*Cout) lanes = (ko, w, c)   image rows (2e, 2e+1)
    """
    Wt = np.asarray(params["Wt"], np.float32)   # (Cin, Cout, 2, 2)  ConvTranspose2d
    bt = np.asarray(params["bt"], np.float32)   # (Cout,)
    W1 = np.asarray(params["W1"], np.float32)   # (Cout, Cin, 3, 3)  Conv2d #1
    b1 = np.asarray(params["b1"], np.float32)
    W2 = np.asarray(params["W2"], np.float32)   # (Cout, Cout, 3, 3) Conv2d #2
    b2 = np.asarray(params["b2"], np.float32)

    N, H, W, Cin = x_cur_shape
    _, Hp, Wp, Cp = x_prev_shape
    Cout = Wt.shape[1]
    assert Cin == Cp + Cout, "unetUp requires in_channels = skip_channels + out_channels"
    assert H >= 3 and W >= 3, "need at least a 6x6 upsampled image for two valid 3x3 convs"
    assert Wt.shape == (Cin, Cout, 2, 2) and W1.shape == (Cout, Cin, 3, 3) and W2.shape == (Cout, Cout, 3, 3)
    Ho, Wo = 2 * H, 2 * W
    Wo1, Wo2 = Wo - 2, Wo - 4

    # --- ConvTranspose2d(k=2,s=2): per-input-row banded matrix, output row-paired.
    #     T[w_in*Cin+ci, ki*Wo*Cout + (2*w_in+kj)*Cout + co] = Wt[ci, co, ki, kj]
    T = np.zeros((W * Cin, 2 * Wo * Cout), np.float32)
    for w_in in range(W):
        for ki in range(2):
            for kj in range(2):
                w_out = 2 * w_in + kj
                T[w_in * Cin:(w_in + 1) * Cin,
                  ki * Wo * Cout + w_out * Cout: ki * Wo * Cout + (w_out + 1) * Cout] = Wt[:, :, ki, kj]

    # --- bilinear upsample, align_corners=True, separable.
    Rh = _interp_matrix_np(Ho, Hp)                       # (Ho, Hp)
    Rw = _interp_matrix_np(Wo, Wp)                       # (Wo, Wp)
    Rh2 = np.stack([Rh[0::2], Rh[1::2]]).astype(np.float32)   # (2, H, Hp) even/odd output rows
    # W-direction as a lane-mixing matrix on (wp, cp) -> (wo, cp)  (kron(Rw, I_Cp) transposed)
    RwI = np.einsum("ow,ce->wcoe", Rw, np.eye(Cp, dtype=np.float32)).reshape(Wp * Cp, Wo * Cp)

    # --- conv1 (3x3 valid) as two row-paired banded matrices G[d], d = input pair offset.
    #     Upconv bias bt is folded into the conv1 bias (exact: valid conv, no padding).
    G = np.zeros((2, 2 * Wo * Cin, 2 * Wo1 * Cout), np.float32)
    yoff = 2 * Wo * Cp                                   # lane offset of the upconv half of the slab
    W1p = W1[:, :Cp, :, :]                               # taps hitting the skip half
    W1y = W1[:, Cp:, :, :]                               # taps hitting the upconv half
    for ko in range(2):                                  # output row parity
        for kh in range(3):
            r = ko + kh                                  # input image row relative to 2b
            d, ki = r // 2, r % 2                        # input pair offset, parity
            for kw in range(3):
                for w_out in range(Wo1):
                    w_in = w_out + kw
                    jo = ko * Wo1 * Cout + w_out * Cout
                    jp = ki * Wo * Cp + w_in * Cp
                    jy = yoff + ki * Wo * Cout + w_in * Cout
                    G[d, jp:jp + Cp, jo:jo + Cout] += W1p[:, :, kh, kw].T
                    G[d, jy:jy + Cout, jo:jo + Cout] += W1y[:, :, kh, kw].T
    b1_eff = b1 + np.einsum("oikl,i->o", W1y, bt)

    # --- conv2 (3x3 valid) as two row-paired banded matrices.
    K2 = np.zeros((2, 2 * Wo1 * Cout, 2 * Wo2 * Cout), np.float32)
    for ko in range(2):
        for kh in range(3):
            r = ko + kh
            d, ki = r // 2, r % 2
            for kw in range(3):
                for w_out in range(Wo2):
                    w_in = w_out + kw
                    jo = ko * Wo2 * Cout + w_out * Cout
                    ji = ki * Wo1 * Cout + w_in * Cout
                    K2[d, ji:ji + Cout, jo:jo + Cout] += W2[:, :, kh, kw].T

    # --- biases tiled over (parity, width) lanes; conv2 row zero-padded to conv1 width.
    bias = np.zeros((2, 2 * Wo1 * Cout), np.float32)
    bias[0] = np.tile(b1_eff, 2 * Wo1)
    bias[1, :2 * Wo2 * Cout] = np.tile(b2, 2 * Wo2)

    bf16 = jnp.bfloat16
    return dict(
        T=jnp.asarray(T, bf16),
        RwI=jnp.asarray(RwI, bf16),
        Rh2=jnp.asarray(Rh2, bf16),
        G=jnp.asarray(G, bf16),
        K2=jnp.asarray(K2, bf16),
        bias=jnp.asarray(bias, jnp.float32),
    )


# ----------------------------------------------------------------------------
# Fused Pallas kernel: upconv + upsample + concat + (conv3x3+ReLU) x2, per batch
# ----------------------------------------------------------------------------
def _unet_up_kernel(xc_ref, xp_ref, t_ref, rwi_ref, rh_ref, g_ref, k_ref, b_ref, o_ref):
    f32, bf16 = jnp.float32, jnp.bfloat16
    xc = xc_ref[0]                        # (H,  W*Cin)   bf16
    xp = xp_ref[0]                        # (Hp, Wp*Cp)   bf16
    H = xc.shape[0]
    n2 = o_ref.shape[-1]                  # 2*Wo2*Cout

    # ConvTranspose2d(k=2, s=2): one banded GEMM; output rows are already (2a, 2a+1) pairs.
    y_p = jnp.dot(xc, t_ref[...], preferred_element_type=f32)                 # (H, 2*Wo*Cout)

    # Bilinear upsample (align_corners=True), separable: W-mix GEMM, then even/odd H-mix GEMMs.
    xw = jnp.dot(xp, rwi_ref[...], preferred_element_type=f32).astype(bf16)   # (Hp, Wo*Cp)
    pe = jnp.dot(rh_ref[0], xw, preferred_element_type=f32)                   # (H, Wo*Cp)  rows 2a
    po = jnp.dot(rh_ref[1], xw, preferred_element_type=f32)                   # (H, Wo*Cp)  rows 2a+1

    # Channel concat, grouped lanes [prev even | prev odd | upconv (ki,w,c)] -- matches G's layout.
    xcat = jnp.concatenate([pe, po, y_p], axis=-1).astype(bf16)               # (H, 2*Wo*Cin)

    # conv1 3x3 valid (+ folded upconv bias) + ReLU: two row-paired banded GEMMs.
    acc1 = jnp.dot(xcat[0:H - 1], g_ref[0], preferred_element_type=f32)
    acc1 = acc1 + jnp.dot(xcat[1:H], g_ref[1], preferred_element_type=f32)
    c1 = jnp.maximum(acc1 + b_ref[0:1, :], 0.0).astype(bf16)                  # (H-1, 2*Wo1*Cout)

    # conv2 3x3 valid + ReLU.
    acc2 = jnp.dot(c1[0:H - 2], k_ref[0], preferred_element_type=f32)
    acc2 = acc2 + jnp.dot(c1[1:H - 1], k_ref[1], preferred_element_type=f32)
    c2 = jnp.maximum(acc2 + b_ref[1:2, :n2], 0.0)                             # (H-2, 2*Wo2*Cout)

    o_ref[...] = c2[None].astype(o_ref.dtype)


# ----------------------------------------------------------------------------
# Wrapper: single pallas_call over the batch grid (weights already prepacked)
# ----------------------------------------------------------------------------
def unet_up_forward(x_cur, x_prev, packed):
    N, H, W, Cin = x_cur.shape
    _, Hp, Wp, Cp = x_prev.shape
    Ho, Wo = 2 * H, 2 * W
    Cout = packed["T"].shape[1] // (2 * Wo)
    Wo1, Wo2 = Wo - 2, Wo - 4
    Ho2 = Ho - 4

    # Free (contiguous) reshapes + bf16 cast outside the kernel: halves activation DMA.
    xc2 = x_cur.reshape(N, H, W * Cin).astype(jnp.bfloat16)
    xp2 = x_prev.reshape(N, Hp, Wp * Cp).astype(jnp.bfloat16)

    out_p = pl.pallas_call(
        _unet_up_kernel,
        out_shape=jax.ShapeDtypeStruct((N, H - 2, 2 * Wo2 * Cout), jnp.float32),
        grid=(N,),
        in_specs=[
            pl.BlockSpec((1, H, W * Cin), lambda n: (n, 0, 0)),                      # x_cur (per batch)
            pl.BlockSpec((1, Hp, Wp * Cp), lambda n: (n, 0, 0)),                     # x_prev (per batch)
            pl.BlockSpec((W * Cin, 2 * Wo * Cout), lambda n: (0, 0)),                # upconv banded taps
            pl.BlockSpec((Wp * Cp, Wo * Cp), lambda n: (0, 0)),                      # W-interp lane mix
            pl.BlockSpec((2, H, Hp), lambda n: (0, 0, 0)),                           # H-interp even/odd
            pl.BlockSpec((2, 2 * Wo * Cin, 2 * Wo1 * Cout), lambda n: (0, 0, 0)),    # conv1 banded taps
            pl.BlockSpec((2, 2 * Wo1 * Cout, 2 * Wo2 * Cout), lambda n: (0, 0, 0)),  # conv2 banded taps
            pl.BlockSpec((2, 2 * Wo1 * Cout), lambda n: (0, 0)),                     # packed biases (f32)
        ],
        out_specs=pl.BlockSpec((1, H - 2, 2 * Wo2 * Cout), lambda n: (n, 0, 0)),
        compiler_params=pltpu.CompilerParams(
            dimension_semantics=("parallel",),
            vmem_limit_bytes=64 * 1024 * 1024),
    )(xc2, xp2, packed["T"], packed["RwI"], packed["Rh2"],
      packed["G"], packed["K2"], packed["bias"])

    # (N, H-2, 2*Wo2*Cout) -> (N, Ho2, Wo2, Cout): pure metadata reshape, row pairs un-pair row-major.
    return out_p.reshape(N, Ho2, Wo2, Cout)


# ----------------------------------------------------------------------------
# Pure-JAX reference (mirrors the PyTorch semantics, f32)
# ----------------------------------------------------------------------------
def unet_up_reference(x_cur, x_prev, params):
    Wt, bt, W1, b1, W2, b2 = (params[k] for k in ("Wt", "bt", "W1", "b1", "W2", "b2"))
    N, H, W, Cin = x_cur.shape
    Cout = Wt.shape[1]

    y = jnp.einsum("nhwc,cokl->nhkwlo", x_cur, Wt).reshape(N, 2 * H, 2 * W, Cout) + bt
    Rh = jnp.asarray(_interp_matrix_np(2 * H, x_prev.shape[1]))
    Rw = jnp.asarray(_interp_matrix_np(2 * W, x_prev.shape[2]))
    pu = jnp.einsum("oh,nhwc->nowc", Rh, x_prev)
    pu = jnp.einsum("pw,nhwc->nhpc", Rw, pu)
    x = jnp.concatenate([pu, y], axis=-1)

    def conv(v, Wk, b):
        o = jax.lax.conv_general_dilated(
            v, Wk.transpose(2, 3, 1, 0), (1, 1), "VALID",
            dimension_numbers=("NHWC", "HWIO", "NHWC"))
        return jnp.maximum(o + b, 0.0)

    return conv(conv(x, W1, b1), W2, b2)


# ----------------------------------------------------------------------------
if __name__ == "__main__":
    Cin, Cout = 8, 4                         # in_channels=8, out_channels=4 (skip has Cin-Cout channels)
    key = jax.random.PRNGKey(0)
    ks = jax.random.split(key, 8)

    params = {
        # ConvTranspose2d weight: (Cin, Cout, 2, 2) -- PyTorch convention
        "Wt": 0.1 * jax.random.normal(ks[0], (Cin, Cout, 2, 2), jnp.float32),
        "bt": 0.1 * jax.random.normal(ks[1], (Cout,), jnp.float32),
        # Conv2d weights: (Cout, Cin, 3, 3) / (Cout, Cout, 3, 3) -- PyTorch convention
        "W1": 0.1 * jax.random.normal(ks[2], (Cout, Cin, 3, 3), jnp.float32),
        "b1": 0.1 * jax.random.normal(ks[3], (Cout,), jnp.float32),
        "W2": 0.1 * jax.random.normal(ks[4], (Cout, Cout, 3, 3), jnp.float32),
        "b2": 0.1 * jax.random.normal(ks[5], (Cout,), jnp.float32),
    }

    # layout: NHWC (PyTorch equivalents: x_cur (2,8,8,8), x_prev (2,4,15,15) in NCHW)
    x_cur = jax.random.normal(ks[6], (2, 8, 8, Cin), jnp.float32)
    x_prev = jax.random.normal(ks[7], (2, 15, 15, Cin - Cout), jnp.float32)

    # one-time weight repack (hoisted out of the forward, per review)
    packed = prepack_unet_up(params, x_cur.shape, x_prev.shape)

    out = jax.block_until_ready(unet_up_forward(x_cur, x_prev, packed))
    ref = jax.block_until_ready(unet_up_reference(x_cur, x_prev, params))
    assert out.shape == ref.shape == (2, 12, 12, Cout), out.shape
    np.testing.assert_allclose(np.asarray(out), np.asarray(ref), rtol=5e-2, atol=5e-2)

    print("KERNEL_OK")
</pallas_src>

<mosaic_0001>
module attributes {stable_mosaic.version = 11 : i64} {
  func.func @_unet_up_kernel(%arg0: i32, %arg1: memref<1x8x64xbf16, #tpu.memory_space<vmem>>, %arg2: memref<1x15x60xbf16, #tpu.memory_space<vmem>>, %arg3: memref<64x128xbf16, #tpu.memory_space<vmem>>, %arg4: memref<60x64xbf16, #tpu.memory_space<vmem>>, %arg5: memref<2x8x15xbf16, #tpu.memory_space<vmem>>, %arg6: memref<2x256x112xbf16, #tpu.memory_space<vmem>>, %arg7: memref<2x112x96xbf16, #tpu.memory_space<vmem>>, %arg8: memref<2x112xf32, #tpu.memory_space<vmem>>, %arg9: memref<1x6x96xf32, #tpu.memory_space<vmem>>) attributes {dimension_semantics = [#tpu.dimension_semantics<parallel>], iteration_bounds = array<i64: 2>, scalar_prefetch = 0 : i64, scratch_operands = 0 : i64, tpu.core_type = #tpu.core_type<tc>, window_params = [{transform_indices = @transform_0, window_bounds = array<i64: 1, 8, 64>}, {transform_indices = @transform_1, window_bounds = array<i64: 1, 15, 60>}, {pipeline_mode = #tpu.pipeline_mode<synchronous>, transform_indices = @transform_2, window_bounds = array<i64: 64, 128>}, {pipeline_mode = #tpu.pipeline_mode<synchronous>, transform_indices = @transform_3, window_bounds = array<i64: 60, 64>}, {pipeline_mode = #tpu.pipeline_mode<synchronous>, transform_indices = @transform_4, window_bounds = array<i64: 2, 8, 15>}, {pipeline_mode = #tpu.pipeline_mode<synchronous>, transform_indices = @transform_5, window_bounds = array<i64: 2, 256, 112>}, {pipeline_mode = #tpu.pipeline_mode<synchronous>, transform_indices = @transform_6, window_bounds = array<i64: 2, 112, 96>}, {pipeline_mode = #tpu.pipeline_mode<synchronous>, transform_indices = @transform_7, window_bounds = array<i64: 2, 112>}, {transform_indices = @transform_8, window_bounds = array<i64: 1, 6, 96>}]} {
    %c0 = arith.constant 0 : index
    %c0_0 = arith.constant 0 : index
    %c0_1 = arith.constant 0 : index
    %0 = vector.load %arg1[%c0, %c0_0, %c0_1] : memref<1x8x64xbf16, #tpu.memory_space<vmem>>, vector<1x8x64xbf16>
    %1 = vector.shape_cast %0 : vector<1x8x64xbf16> to vector<8x64xbf16>
    %c0_2 = arith.constant 0 : index
    %c0_3 = arith.constant 0 : index
    %c0_4 = arith.constant 0 : index
    %2 = vector.load %arg2[%c0_2, %c0_3, %c0_4] : memref<1x15x60xbf16, #tpu.memory_space<vmem>>, vector<1x15x60xbf16>
    %3 = vector.shape_cast %2 : vector<1x15x60xbf16> to vector<15x60xbf16>
    %c0_5 = arith.constant 0 : index
    %c0_6 = arith.constant 0 : index
    %4 = vector.load %arg3[%c0_5, %c0_6] : memref<64x128xbf16, #tpu.memory_space<vmem>>, vector<64x128xbf16>
    %cst = arith.constant dense<0.000000e+00> : vector<8x128xf32>
    %5 = tpu.matmul %1, %4, %cst {dimension_numbers = #tpu.dot_dimension_numbers<[1], [0], [0], [1], [0, 0, 1, 1], [], []>} : vector<8x64xbf16>, vector<64x128xbf16>, vector<8x128xf32> -> vector<8x128xf32>
    %c0_7 = arith.constant 0 : index
    %c0_8 = arith.constant 0 : index
    %6 = vector.load %arg4[%c0_7, %c0_8] : memref<60x64xbf16, #tpu.memory_space<vmem>>, vector<60x64xbf16>
    %cst_9 = arith.constant dense<0.000000e+00> : vector<15x64xf32>
    %7 = tpu.matmul %3, %6, %cst_9 {dimension_numbers = #tpu.dot_dimension_numbers<[1], [0], [0], [1], [0, 0, 1, 1], [], []>} : vector<15x60xbf16>, vector<60x64xbf16>, vector<15x64xf32> -> vector<15x64xf32>
    %8 = arith.truncf %7 : vector<15x64xf32> to vector<15x64xbf16>
    %c0_10 = arith.constant 0 : index
    %c0_11 = arith.constant 0 : index
    %c0_12 = arith.constant 0 : index
    %9 = vector.load %arg5[%c0_10, %c0_11, %c0_12] : memref<2x8x15xbf16, #tpu.memory_space<vmem>>, vector<1x8x15xbf16>
    %10 = vector.shape_cast %9 : vector<1x8x15xbf16> to vector<8x15xbf16>
    %cst_13 = arith.constant dense<0.000000e+00> : vector<8x64xf32>
    %11 = tpu.matmul %10, %8, %cst_13 {dimension_numbers = #tpu.dot_dimension_numbers<[1], [0], [0], [1], [0, 0, 1, 1], [], []>} : vector<8x15xbf16>, vector<15x64xbf16>, vector<8x64xf32> -> vector<8x64xf32>
    %c1 = arith.constant 1 : index
    %c0_14 = arith.constant 0 : index
    %c0_15 = arith.constant 0 : index
    %12 = vector.load %arg5[%c1, %c0_14, %c0_15] : memref<2x8x15xbf16, #tpu.memory_space<vmem>>, vector<1x8x15xbf16>
    %13 = vector.shape_cast %12 : vector<1x8x15xbf16> to vector<8x15xbf16>
    %cst_16 = arith.constant dense<0.000000e+00> : vector<8x64xf32>
    %14 = tpu.matmul %13, %8, %cst_16 {dimension_numbers = #tpu.dot_dimension_numbers<[1], [0], [0], [1], [0, 0, 1, 1], [], []>} : vector<8x15xbf16>, vector<15x64xbf16>, vector<8x64xf32> -> vector<8x64xf32>
    %15 = tpu.concatenate %11, %14, %5 in 1 : vector<8x64xf32>, vector<8x64xf32>, vector<8x128xf32> -> vector<8x256xf32>
    %16 = arith.truncf %15 : vector<8x256xf32> to vector<8x256xbf16>
    %17 = vector.extract_strided_slice %16 {offsets = [0, 0], sizes = [7, 256], strides = [1, 1]} : vector<8x256xbf16> to vector<7x256xbf16>
    %c0_17 = arith.constant 0 : index
    %c0_18 = arith.constant 0 : index
    %c0_19 = arith.constant 0 : index
    %18 = vector.load %arg6[%c0_17, %c0_18, %c0_19] : memref<2x256x112xbf16, #tpu.memory_space<vmem>>, vector<1x256x112xbf16>
    %19 = vector.shape_cast %18 : vector<1x256x112xbf16> to vector<256x112xbf16>
    %cst_20 = arith.constant dense<0.000000e+00> : vector<7x112xf32>
    %20 = tpu.matmul %17, %19, %cst_20 {dimension_numbers = #tpu.dot_dimension_numbers<[1], [0], [0], [1], [0, 0, 1, 1], [], []>} : vector<7x256xbf16>, vector<256x112xbf16>, vector<7x112xf32> -> vector<7x112xf32>
    %21 = vector.extract_strided_slice %16 {offsets = [1, 0], sizes = [7, 256], strides = [1, 1]} : vector<8x256xbf16> to vector<7x256xbf16>
    %c1_21 = arith.constant 1 : index
    %c0_22 = arith.constant 0 : index
    %c0_23 = arith.constant 0 : index
    %22 = vector.load %arg6[%c1_21, %c0_22, %c0_23] : memref<2x256x112xbf16, #tpu.memory_space<vmem>>, vector<1x256x112xbf16>
    %23 = vector.shape_cast %22 : vector<1x256x112xbf16> to vector<256x112xbf16>
    %cst_24 = arith.constant dense<0.000000e+00> : vector<7x112xf32>
    %24 = tpu.matmul %21, %23, %cst_24 {dimension_numbers = #tpu.dot_dimension_numbers<[1], [0], [0], [1], [0, 0, 1, 1], [], []>} : vector<7x256xbf16>, vector<256x112xbf16>, vector<7x112xf32> -> vector<7x112xf32>
    %25 = arith.addf %20, %24 : vector<7x112xf32>
    %c0_25 = arith.constant 0 : index
    %c0_26 = arith.constant 0 : index
    %26 = vector.load %arg8[%c0_25, %c0_26] : memref<2x112xf32, #tpu.memory_space<vmem>>, vector<1x112xf32>
    %27 = vector.broadcast %26 : vector<1x112xf32> to vector<7x112xf32>
    %28 = arith.addf %25, %27 : vector<7x112xf32>
    %cst_27 = arith.constant 0.000000e+00 : f32
    %29 = vector.broadcast %cst_27 : f32 to vector<7x112xf32>
    %30 = arith.maximumf %28, %29 : vector<7x112xf32>
    %31 = arith.truncf %30 : vector<7x112xf32> to vector<7x112xbf16>
    %32 = vector.extract_strided_slice %31 {offsets = [0, 0], sizes = [6, 112], strides = [1, 1]} : vector<7x112xbf16> to vector<6x112xbf16>
    %c0_28 = arith.constant 0 : index
    %c0_29 = arith.constant 0 : index
    %c0_30 = arith.constant 0 : index
    %33 = vector.load %arg7[%c0_28, %c0_29, %c0_30] : memref<2x112x96xbf16, #tpu.memory_space<vmem>>, vector<1x112x96xbf16>
    %34 = vector.shape_cast %33 : vector<1x112x96xbf16> to vector<112x96xbf16>
    %cst_31 = arith.constant dense<0.000000e+00> : vector<6x96xf32>
    %35 = tpu.matmul %32, %34, %cst_31 {dimension_numbers = #tpu.dot_dimension_numbers<[1], [0], [0], [1], [0, 0, 1, 1], [], []>} : vector<6x112xbf16>, vector<112x96xbf16>, vector<6x96xf32> -> vector<6x96xf32>
    %36 = vector.extract_strided_slice %31 {offsets = [1, 0], sizes = [6, 112], strides = [1, 1]} : vector<7x112xbf16> to vector<6x112xbf16>
    %c1_32 = arith.constant 1 : index
    %c0_33 = arith.constant 0 : index
    %c0_34 = arith.constant 0 : index
    %37 = vector.load %arg7[%c1_32, %c0_33, %c0_34] : memref<2x112x96xbf16, #tpu.memory_space<vmem>>, vector<1x112x96xbf16>
    %38 = vector.shape_cast %37 : vector<1x112x96xbf16> to vector<112x96xbf16>
    %cst_35 = arith.constant dense<0.000000e+00> : vector<6x96xf32>
    %39 = tpu.matmul %36, %38, %cst_35 {dimension_numbers = #tpu.dot_dimension_numbers<[1], [0], [0], [1], [0, 0, 1, 1], [], []>} : vector<6x112xbf16>, vector<112x96xbf16>, vector<6x96xf32> -> vector<6x96xf32>
    %40 = arith.addf %35, %39 : vector<6x96xf32>
    %c1_36 = arith.constant 1 : index
    %c0_37 = arith.constant 0 : index
    %41 = vector.load %arg8[%c1_36, %c0_37] : memref<2x112xf32, #tpu.memory_space<vmem>>, vector<1x96xf32>
    %42 = vector.broadcast %41 : vector<1x96xf32> to vector<6x96xf32>
    %43 = arith.addf %40, %42 : vector<6x96xf32>
    %cst_38 = arith.constant 0.000000e+00 : f32
    %44 = vector.broadcast %cst_38 : f32 to vector<6x96xf32>
    %45 = arith.maximumf %43, %44 : vector<6x96xf32>
    %46 = vector.shape_cast %45 : vector<6x96xf32> to vector<1x6x96xf32>
    %c0_39 = arith.constant 0 : index
    %c0_40 = arith.constant 0 : index
    %c0_41 = arith.constant 0 : index
    %47 = vector.load %arg9[%c0_39, %c0_40, %c0_41] : memref<1x6x96xf32, #tpu.memory_space<vmem>>, vector<1x6x96xf32>
    tpu.vector_store %arg9[%c0_39, %c0_40, %c0_41], %46 {strides = array<i32>} : memref<1x6x96xf32, #tpu.memory_space<vmem>>, vector<1x6x96xf32>,
    return
  }
  func.func @transform_0(%arg0: i32) -> (i32, i32, i32) {
    %c0_i32 = arith.constant 0 : i32
    %c0_i32_0 = arith.constant 0 : i32
    %c0_i32_1 = arith.constant 0 : i32
    return %arg0, %c0_i32, %c0_i32_0 : i32, i32, i32
  }
  func.func @transform_1(%arg0: i32) -> (i32, i32, i32) {
    %c0_i32 = arith.constant 0 : i32
    %c0_i32_0 = arith.constant 0 : i32
    %c0_i32_1 = arith.constant 0 : i32
    return %arg0, %c0_i32, %c0_i32_0 : i32, i32, i32
  }
  func.func @transform_2(%arg0: i32) -> (i32, i32) {
    %c0_i32 = arith.constant 0 : i32
    %c0_i32_0 = arith.constant 0 : i32
    %c0_i32_1 = arith.constant 0 : i32
    return %c0_i32, %c0_i32_0 : i32, i32
  }
  func.func @transform_3(%arg0: i32) -> (i32, i32) {
    %c0_i32 = arith.constant 0 : i32
    %c0_i32_0 = arith.constant 0 : i32
    %c0_i32_1 = arith.constant 0 : i32
    return %c0_i32, %c0_i32_0 : i32, i32
  }
  func.func @transform_4(%arg0: i32) -> (i32, i32, i32) {
    %c0_i32 = arith.constant 0 : i32
    %c0_i32_0 = arith.constant 0 : i32
    %c0_i32_1 = arith.constant 0 : i32
    %c0_i32_2 = arith.constant 0 : i32
    return %c0_i32, %c0_i32_0, %c0_i32_1 : i32, i32, i32
  }
  func.func @transform_5(%arg0: i32) -> (i32, i32, i32) {
    %c0_i32 = arith.constant 0 : i32
    %c0_i32_0 = arith.constant 0 : i32
    %c0_i32_1 = arith.constant 0 : i32
    %c0_i32_2 = arith.constant 0 : i32
    return %c0_i32, %c0_i32_0, %c0_i32_1 : i32, i32, i32
  }
  func.func @transform_6(%arg0: i32) -> (i32, i32, i32) {
    %c0_i32 = arith.constant 0 : i32
    %c0_i32_0 = arith.constant 0 : i32
    %c0_i32_1 = arith.constant 0 : i32
    %c0_i32_2 = arith.constant 0 : i32
    return %c0_i32, %c0_i32_0, %c0_i32_1 : i32, i32, i32
  }
  func.func @transform_7(%arg0: i32) -> (i32, i32) {
    %c0_i32 = arith.constant 0 : i32
    %c0_i32_0 = arith.constant 0 : i32
    %c0_i32_1 = arith.constant 0 : i32
    return %c0_i32, %c0_i32_0 : i32, i32
  }
  func.func @transform_8(%arg0: i32) -> (i32, i32, i32) {
    %c0_i32 = arith.constant 0 : i32
    %c0_i32_0 = arith.constant 0 : i32
    %c0_i32_1 = arith.constant 0 : i32
    return %arg0, %c0_i32, %c0_i32_0 : i32, i32, i32
  }
}

</mosaic_0001>

<bundles_post_ra>
// kernel: tpu_custom_call.1
= control target key start
LH: loop header
LB: loop body
LE: loop exit
PB: predicated region body
PF: predicated region fallthrough
CT: control target
= control target key end

     0   :  { %s2684_s0 = inlined_call_operand.hbm [shape: bf16[2,8,64], index: 0, kind: input, shape index: {}]   ;;  %s2685_s1 = inlined_call_operand.hbm [shape: bf16[2,15,60], index: 1, kind: input, shape index: {}]   ;;  %s2686_s2 = inlined_call_operand.hbm [shape: bf16[64,128], index: 2, kind: input, shape index: {}]   ;;  %s2687_s3 = inlined_call_operand.hbm [shape: bf16[60,64], index: 3, kind: input, shape index: {}]   ;;  %s2688_s4 = inlined_call_operand.hbm [shape: bf16[2,8,15], index: 4, kind: input, shape index: {}]   ;;  %s2689_s5 = inlined_call_operand.hbm [shape: bf16[2,256,112], index: 5, kind: input, shape index: {}]   ;;  %s2690_s6 = inlined_call_operand.hbm [shape: bf16[2,112,96], index: 6, kind: input, shape index: {}]   ;;  %s2691_s7 = inlined_call_operand.hbm [shape: f32[2,112], index: 7, kind: input, shape index: {}]   ;;  %s2692_s8 = inlined_call_operand.hbm [shape: f32[2,6,96], index: 8, kind: output, shape index: {}]  }
   0x1   :  { %2698 = sst [smem:[#allocation24_spill]] %s2684_s0 }
   0x2   :  { %2699 = sst [smem:[#allocation25_spill]] %s2686_s2 }
   0x3   :  { %2700 = sst [smem:[#allocation26_spill]] %s2687_s3 }
   0x4   :  { %2701 = sst [smem:[#allocation27_spill]] %s2688_s4 }
   0x5   :  { %13 = vsyncpa [#allocation3], 0 }
   0x6   :  { %15 = vsyncpa [#allocation3 + $0x1], 0 }
   0x7   :  { %16 = vsyncpa [#allocation6], 0 }
   0x8   :  { %18 = vsyncpa [#allocation6 + $0x1], 0 }
   0x9   :  { %19 = vsyncpa [#allocation9], 0 }
   0xa   :  { %20 = vsyncpa [#allocation12], 0 }
   0xb   :  { %21 = vsyncpa [#allocation15], 0 }
   0xc   :  { %22 = vsyncpa [#allocation4], 0 }
   0xd   :  { %24 = vsyncpa [#allocation4 + $0x1], 0  ;;  %s2243_s27 = smov 0   ;;  %s2245_s28 = smov 0  }
   0xe   :  { %s2247_s29 = smov 0   ;;  %s2249_s30 = smov 0  }
   0xf LB: > { %s2183_s9 = smov [#allocation7]   ;;  %s2264_s11 = sadd.s32 4294967295, %s2181_s30   ;;  %s2181_s30 = sphi %s2249_s30, %s2733_s30   ;;  %s2177_s29 = sphi %s2247_s29, %s2732_s29   ;;  %s2173_s28 = sphi %s2245_s28, %s2731_s28   ;;  %s2169_s27 = sphi %s2243_s27, %s2730_s27  }
  0x10   : > { %s251_s10 = sshll.u32 %s2183_s9, 4  ;;  %p1457_p0 = scmp.ge.s32.totalorder %s2181_s30, 1  ;;  %s2269_s10 = int_to_ptr.vmem [resolvable:$true] %s251_s10 }
  0x11   : > { %p2693_p1 = scmp.eq.s32.totalorder %s2264_s11, 0  ;;  %p239_p2 = scmp.lt.s32.totalorder %s2181_s30, 3 }
  0x12   : > { %s2184_s13 = smov [#allocation8]   ;;  %s2185_s16 = smov [#allocation11]  }
  0x13   : > { %p2271_p3 = pnand %p1457_p0, %p239_p2  ;;  %s264_s14 = sshll.u32 %s2184_s13, 4  ;;  %s2284_s14 = int_to_ptr.vmem [resolvable:$true] %s264_s14 }
  0x14   : > { %s290_s17 = sshll.u32 %s2185_s16, 4  ;;  %s2704_s2 = sld [smem:[#allocation25_spill]]  ;;  %s2286_s17 = int_to_ptr.vmem [resolvable:$true] %s290_s17 }
  0x15   : > { %s2702_s12 = scalar_select %p2271_p3, 1, 0 }
  0x16   : > { %p1724_p5 = pneg %p2271_p3 }
  0x18   : > { %p2280_p6 = pnand %p1724_p5, %p2693_p1 }
  0x1a   : > { %s1867_s20 = scalar_lea.hbm %s2704_s2, 512  ;;  %p2296_p8 = pneg %p2280_p6 }
  0x1b   : > { %p1868_p7 = scmp.ne.s32.totalorder %s2704_s2, %s1867_s20  ;;  %p1874_p11 = scmp.lt.u32.totalorder %s1867_s20, %s2704_s2 }
  0x1d   : > { %p1870_p9 = pnand %p2296_p8, %p1868_p7 }
  0x1f   : > { %p1871_p10 = pneg %p1870_p9 }
  0x21   : > { %p1876_p12 = pnand %p1874_p11, %p1871_p10 }
  0x23   : > { %1879 = shalt.err (!%p1876_p12)
}
  0x24   : > { %s1880_s26 = scalar_lea.vmem %s2269_s10, 512  ;;  %p1888_p5 = scmp.lt.s32.totalorder %s2269_s10, %s2269_s10 }
  0x25   : > { %p1881_p13 = scmp.ne.s32.totalorder %s2269_s10, %s1880_s26  ;;  %p1889_p4 = scmp.lt.s32.totalorder %s1880_s26, %s1880_s26 }
  0x27   : > { %p1883_p0 = pnand %p1881_p13, %p2296_p8  ;;  %p1890_p7 = por %p1889_p4, %p1888_p5 }
  0x29   : > { %p1884_p2 = pneg %p1883_p0 }
  0x2b   : > { %p1891_p9 = pnand %p1890_p7, %p1884_p2 }
  0x2d   : > { %1894 = shalt.err (!%p1891_p9)
}
  0x2e   : > { %s2695_s9 = smov 64   ;;  %s2696_s13 = smov 4  }
  0x2f   : > { %1727 = dma.hbm_to_vmem [thread:$0]  (!%p2280_p6), %s2704_s2, 512, %s2269_s10, [#allocation6], %s2695_s9, %s2695_s9, %s2696_s13  }
  0x30   : > { %s2706_s3 = sld [smem:[#allocation26_spill]] }
  0x36   : > { %s1895_s21 = scalar_lea.hbm %s2706_s3, 512 }
  0x37   : > { %p1896_p4 = scmp.ne.s32.totalorder %s2706_s3, %s1895_s21  ;;  %p1902_p12 = scmp.lt.u32.totalorder %s1895_s21, %s2706_s3 }
  0x39   : > { %p1898_p10 = pnand %p1896_p4, %p2296_p8 }
  0x3b   : > { %p1899_p11 = pneg %p1898_p10 }
  0x3d   : > { %p1904_p13 = pnand %p1902_p12, %p1899_p11 }
  0x3f   : > { %1907 = shalt.err (!%p1904_p13)
}
  0x40   : > { %s1908_s10 = scalar_lea.vmem %s2284_s14, 512  ;;  %p1916_p7 = scmp.lt.s32.totalorder %s2284_s14, %s2284_s14 }
  0x41   : > { %p1909_p0 = scmp.ne.s32.totalorder %s2284_s14, %s1908_s10  ;;  %p1917_p9 = scmp.lt.s32.totalorder %s1908_s10, %s1908_s10 }
  0x43   : > { %p1911_p2 = pnand %p1909_p0, %p2296_p8  ;;  %p1918_p4 = por %p1917_p9, %p1916_p7 }
  0x45   : > { %p1912_p5 = pneg %p1911_p2 }
  0x47   : > { %p1919_p10 = pnand %p1918_p4, %p1912_p5 }
  0x49   : > { %1922 = shalt.err (!%p1919_p10)
}
  0x4a   : > { %1730 = dma.hbm_to_vmem [thread:$0]  (!%p2280_p6), %s2706_s3, 512, %s2284_s14, [#allocation9], %s2695_s9, %s2695_s9, %s2696_s13  }
  0x4b   : > { %s1923_s21 = scalar_lea.hbm %s2689_s5, 4096 }
  0x4c   : > { %p1924_p11 = scmp.ne.s32.totalorder %s2689_s5, %s1923_s21  ;;  %p1930_p0 = scmp.lt.u32.totalorder %s1923_s21, %s2689_s5 }
  0x4e   : > { %p1926_p12 = pnand %p1924_p11, %p2296_p8 }
  0x50   : > { %p1927_p13 = pneg %p1926_p12 }
  0x52   : > { %p1932_p2 = pnand %p1930_p0, %p1927_p13 }
  0x54   : > { %1935 = shalt.err (!%p1932_p2)
}
  0x55   : > { %s1936_s14 = scalar_lea.vmem %s2286_s17, 4096  ;;  %p1944_p4 = scmp.lt.s32.totalorder %s2286_s17, %s2286_s17 }
  0x56   : > { %p1937_p5 = scmp.ne.s32.totalorder %s2286_s17, %s1936_s14  ;;  %p1945_p10 = scmp.lt.s32.totalorder %s1936_s14, %s1936_s14 }
  0x58   : > { %p1939_p7 = pnand %p1937_p5, %p2296_p8  ;;  %p1946_p11 = por %p1945_p10, %p1944_p4 }
  0x5a   : > { %p1940_p9 = pneg %p1939_p7 }
  0x5c   : > { %p1947_p12 = pnand %p1946_p11, %p1940_p9 }
  0x5e   : > { %1950 = shalt.err (!%p1947_p12)
}
  0x5f   : > { %1736 = dma.hbm_to_vmem [thread:$0]  (!%p2280_p6), %s2689_s5, 4096, %s2286_s17, [#allocation12], %s2695_s9, %s2695_s9, %s2696_s13  }
  0x60   : > { %s2188_s18 = smov [#allocation10]   ;;  %s2189_s20 = smov [#allocation13]  }
  0x61   : > { %s277_s19 = sshll.u32 %s2188_s18, 4  ;;  %s303_s21 = sshll.u32 %s2189_s20, 4  ;;  %s278_s19 = int_to_ptr.vmem [resolvable:$true] %s277_s19  ;;  %s304_s21 = int_to_ptr.vmem [resolvable:$true] %s303_s21 }
  0x62   : > { %s2707_s4 = sld [smem:[#allocation27_spill]] }
  0x68   : > { %s1951_s25 = scalar_lea.hbm %s2707_s4, 128 }
  0x69   : > { %p1952_p13 = scmp.ne.s32.totalorder %s2707_s4, %s1951_s25  ;;  %p1958_p5 = scmp.lt.u32.totalorder %s1951_s25, %s2707_s4 }
  0x6b   : > { %p1954_p0 = pnand %p1952_p13, %p2296_p8 }
  0x6d   : > { %p1955_p2 = pneg %p1954_p0 }
  0x6f   : > { %p1960_p7 = pnand %p1958_p5, %p1955_p2 }
  0x71   : > { %1963 = shalt.err (!%p1960_p7)
}
  0x72   : > { %s1964_s17 = scalar_lea.vmem %s278_s19, 128  ;;  %p1972_p11 = scmp.lt.s32.totalorder %s278_s19, %s278_s19 }
  0x73   : > { %p1965_p9 = scmp.ne.s32.totalorder %s278_s19, %s1964_s17  ;;  %p1973_p12 = scmp.lt.s32.totalorder %s1964_s17, %s1964_s17 }
  0x75   : > { %p1967_p4 = pnand %p1965_p9, %p2296_p8  ;;  %p1974_p1 = por %p1973_p12, %p1972_p11 }
  0x77   : > { %p1968_p10 = pneg %p1967_p4 }
  0x79   : > { %p1975_p3 = pnand %p1974_p1, %p1968_p10 }
  0x7b   : > { %1978 = shalt.err (!%p1975_p3)
}
  0x7c   : > { %1733 = dma.hbm_to_vmem [thread:$0]  (!%p2280_p6), %s2707_s4, 128, %s278_s19, [#allocation9], %s2695_s9, %s2695_s9, %s2696_s13  }
  0x7d   : > { %s1979_s22 = scalar_lea.hbm %s2690_s6, 1792 }
  0x7e   : > { %p1980_p1 = scmp.ne.s32.totalorder %s2690_s6, %s1979_s22  ;;  %p1986_p0 = scmp.lt.u32.totalorder %s1979_s22, %s2690_s6 }
  0x80   : > { %p1982_p3 = pnand %p1980_p1, %p2296_p8 }
  0x82   : > { %p1983_p13 = pneg %p1982_p3 }
  0x84   : > { %p1988_p2 = pnand %p1986_p0, %p1983_p13 }
  0x86   : > { %1991 = shalt.err (!%p1988_p2)
}
  0x87   : > { %s1992_s10 = scalar_lea.vmem %s304_s21, 1792  ;;  %p2000_p4 = scmp.lt.s32.totalorder %s304_s21, %s304_s21 }
  0x88   : > { %p1993_p5 = scmp.ne.s32.totalorder %s304_s21, %s1992_s10  ;;  %p2001_p10 = scmp.lt.s32.totalorder %s1992_s10, %s1992_s10 }
  0x8a   : > { %p1995_p7 = pnand %p1993_p5, %p2296_p8  ;;  %p2002_p11 = por %p2001_p10, %p2000_p4 }
  0x8c   : > { %p1996_p9 = pneg %p1995_p7 }
  0x8e   : > { %p2003_p12 = pnand %p2002_p11, %p1996_p9 }
  0x90   : > { %2006 = shalt.err (!%p2003_p12)
}
  0x91   : > { %1739 = dma.hbm_to_vmem [thread:$0]  (!%p2280_p6), %s2690_s6, 1792, %s304_s21, [#allocation12], %s2695_s9, %s2695_s9, %s2696_s13  }
  0x92   : > { %s2190_s2 = smov [#allocation14]   ;;  %s2007_s22 = scalar_lea.hbm %s2691_s7, 32 }
  0x93   : > { %s317_s16 = sshll.u32 %s2190_s2, 4  ;;  %p2008_p1 = scmp.ne.s32.totalorder %s2691_s7, %s2007_s22  ;;  %s318_s16 = int_to_ptr.vmem [resolvable:$true] %s317_s16 }
  0x94   : > { %p2014_p0 = scmp.lt.u32.totalorder %s2007_s22, %s2691_s7 }
  0x95   : > { %p2010_p3 = pnand %p2008_p1, %p2296_p8 }
  0x97   : > { %p2011_p13 = pneg %p2010_p3 }
  0x99   : > { %p2016_p2 = pnand %p2014_p0, %p2011_p13 }
  0x9b   : > { %2019 = shalt.err (!%p2016_p2)
}
  0x9c   : > { %s2020_s21 = scalar_lea.vmem %s318_s16, 32  ;;  %p2028_p4 = scmp.lt.s32.totalorder %s318_s16, %s318_s16 }
  0x9d   : > { %p2021_p5 = scmp.ne.s32.totalorder %s318_s16, %s2020_s21  ;;  %p2029_p10 = scmp.lt.s32.totalorder %s2020_s21, %s2020_s21 }
  0x9f   : > { %p2023_p7 = pnand %p2021_p5, %p2296_p8  ;;  %p2030_p11 = por %p2029_p10, %p2028_p4 }
  0xa1   : > { %p2024_p9 = pneg %p2023_p7 }
  0xa3   : > { %p2031_p12 = pnand %p2030_p11, %p2024_p9 }
  0xa5   : > { %2034 = shalt.err (!%p2031_p12)
}
  0xa6   : > { %1742 = dma.hbm_to_vmem [thread:$0]  (!%p2280_p6), %s2691_s7, 32, %s318_s16, [#allocation15]  }
  0xa7   : > { %s1456_s23 = sadd.s32 4294967294, %s2181_s30   ;;  %s2434_s15 = sadd.s32 1, %s2181_s30  }
  0xa8   : > { %s34_s17 = ssub.s32 %s2181_s30, %s2434_s15  ;;  %s37_s2 = sadd.s32 1, %s2177_s29 }
  0xa9   : > { %p35_p8 = scmp.eq.s32.totalorder %s34_s17, 0  ;;  %p44_p1 = scmp.ne.s32.totalorder %s2177_s29, %s2173_s28 }
  0xaa   : > { %p45_p3 = scmp.eq.s32.totalorder %s2181_s30, 0  ;;  %p50_p13 = scmp.ne.s32.totalorder %s2173_s28, %s2169_s27 }
  0xab   : > { %s2445_s18 = scalar_select %p35_p8, %s2177_s29, %s37_s2  }
  0xac   : > { %p2447_p0 = por %p45_p3, %p44_p1  ;;  %p2709_p2 = scmp.eq.s32.totalorder %s2264_s11, 0 }
  0xad   : > { %p226_p5 = scmp.eq.s32.totalorder %s2264_s11, 1  ;;  %p232_p7 = scmp.eq.s32.totalorder %s1456_s23, 1 }
  0xae   : > { %p2453_p6 = por %p2709_p2, %p50_p13  ;;  %p1760_p9 = scmp.lt.s32.totalorder %s2181_s30, 2 }
  0xaf   : > { %s2460_s22 = sand.u32 1, %s2177_s29   ;;  %p2462_p4 = por %p226_p5, %p44_p1 }
  0xb0   : > { %p2466_p10 = por %p232_p7, %p50_p13  ;;  %s1465_s26 = sshll.u32 %s2460_s22, 2 }
  0xb1   : > { %s2711_s24 = scalar_select %p2462_p4, 1, 0 }
  0xb2   : > { %s2712_s25 = scalar_select %p2466_p10, 1, 0 }
  0xb3   : > { %s1466_s14 = sshll.u32 %s2181_s30, 6  ;;  %s2713_s0 = sld [smem:[#allocation24_spill]] }
  0xb4   : > { %s332_s23 = scalar_lea.vmem [#allocation2], %s1465_s26  ;;  %p2481_p11 = pnand %p1760_p9, %p2447_p0 }
  0xb5   : > { %s339_s17 = sshll.u32 %s332_s23, 4  ;;  %s1467_s9 = sshll.u32 %s2460_s22, 3  ;;  %s2477_s17 = int_to_ptr.vmem [resolvable:$true] %s339_s17 }
  0xb6   : > { %s329_s21 = scalar_lea.sflag [#allocation3], %s2460_s22  ;;  %p2037_p8 = pneg %p2481_p11 }
  0xb9   : > { %s2475_s19 = scalar_lea.hbm %s2713_s0, %s1466_s14  ;;  %s2040_s20 = scalar_lea.hbm %s2713_s0, 128 }
  0xba   : > { %s2035_s14 = scalar_lea.hbm %s2475_s19, 64  ;;  %p2041_p13 = scmp.lt.u32.totalorder %s2475_s19, %s2713_s0 }
  0xbb   : > { %p2036_p12 = scmp.ne.s32.totalorder %s2475_s19, %s2035_s14  ;;  %p2042_p0 = scmp.lt.u32.totalorder %s2040_s20, %s2035_s14 }
  0xbc   : > { %p2044_p5 = scmp.lt.u32.totalorder %s2035_s14, %s2475_s19 }
  0xbd   : > { %p2038_p1 = pnand %p2037_p8, %p2036_p12  ;;  %p2043_p2 = por %p2042_p0, %p2041_p13 }
  0xbf   : > { %p2039_p3 = pneg %p2038_p1  ;;  %p2045_p7 = por %p2044_p5, %p2043_p2 }
  0xc1   : > { %p2046_p9 = pnand %p2045_p7, %p2039_p3 }
  0xc3   : > { %2049 = shalt.err (!%p2046_p9)
}
  0xc4   : > { %s2050_s13 = scalar_lea.vmem %s2477_s17, 64  ;;  %s2191_s26 = smov [#allocation2]  }
  0xc5   : > { %p2051_p12 = scmp.ne.s32.totalorder %s2477_s17, %s2050_s13  ;;  %s2055_s10 = sshll.u32 %s2191_s26, 4  ;;  %s2056_s10 = int_to_ptr.vmem [resolvable:$false] %s2055_s10 }
  0xc6   : > { %s2057_s3 = scalar_lea.vmem %s2056_s10, 128  ;;  %p2058_p4 = scmp.lt.s32.totalorder %s2477_s17, %s2056_s10 }
  0xc7   : > { %p2053_p1 = pnand %p2051_p12, %p2037_p8  ;;  %p2059_p13 = scmp.lt.s32.totalorder %s2057_s3, %s2050_s13 }
  0xc9   : > { %p2054_p10 = pneg %p2053_p1  ;;  %p2060_p0 = por %p2059_p13, %p2058_p4 }
  0xcb   : > { %p2061_p2 = pnand %p2060_p0, %p2054_p10 }
  0xcd   : > { %2064 = shalt.err (!%p2061_p2)
}
  0xce   : > { %1746 = dma.hbm_to_vmem [thread:$0]  (!%p2481_p11), %s2475_s19, 64, %s2477_s17, %s329_s21  }
  0xcf   : > { %s350_s14 = scalar_lea.vmem [#allocation5], %s1467_s9  ;;  %s1547_s23 = sshll.u32 %s2181_s30, 7 }
  0xd0   : > { %s357_s20 = sshll.u32 %s350_s14, 4  ;;  %s2521_s10 = scalar_lea.hbm %s2685_s1, %s1547_s23  ;;  %s2515_s20 = int_to_ptr.vmem [resolvable:$true] %s357_s20 }
  0xd1   : > { %s2715_s3 = sand.u32 1, %s2181_s30   ;;  %s2065_s4 = scalar_lea.hbm %s2521_s10, 128 }
  0xd2   : > { %s2525_s0 = scalar_lea.sflag [#allocation6], %s2715_s3  ;;  %p2066_p4 = scmp.ne.s32.totalorder %s2521_s10, %s2065_s4 }
  0xd3   : > { %s2070_s19 = scalar_lea.hbm %s2685_s1, 256  ;;  %p2071_p5 = scmp.lt.u32.totalorder %s2521_s10, %s2685_s1 }
  0xd4   : > { %p2068_p10 = pnand %p2066_p4, %p2037_p8  ;;  %p2072_p7 = scmp.lt.u32.totalorder %s2070_s19, %s2065_s4 }
  0xd5   : > { %p2074_p12 = scmp.lt.u32.totalorder %s2065_s4, %s2521_s10 }
  0xd6   : > { %p2069_p3 = pneg %p2068_p10  ;;  %p2073_p9 = por %p2072_p7, %p2071_p5 }
  0xd8   : > { %p2075_p1 = por %p2074_p12, %p2073_p9 }
  0xda   : > { %p2076_p13 = pnand %p2075_p1, %p2069_p3 }
  0xdc   : > { %2079 = shalt.err (!%p2076_p13)
}
  0xdd   : > { %s2080_s14 = scalar_lea.vmem %s2515_s20, 128  ;;  %s2192_s23 = smov [#allocation5]  }
  0xde   : > { %p2081_p0 = scmp.ne.s32.totalorder %s2515_s20, %s2080_s14  ;;  %s2085_s26 = sshll.u32 %s2192_s23, 4  ;;  %s2086_s26 = int_to_ptr.vmem [resolvable:$false] %s2085_s26 }
  0xdf   : > { %s2087_s13 = scalar_lea.vmem %s2086_s26, 256  ;;  %p2088_p10 = scmp.lt.s32.totalorder %s2515_s20, %s2086_s26 }
  0xe0   : > { %p2083_p2 = pnand %p2081_p0, %p2037_p8  ;;  %p2089_p5 = scmp.lt.s32.totalorder %s2087_s13, %s2080_s14 }
  0xe2   : > { %p2084_p4 = pneg %p2083_p2  ;;  %p2090_p7 = por %p2089_p5, %p2088_p10 }
  0xe4   : > { %p2091_p9 = pnand %p2090_p7, %p2084_p4 }
  0xe6   : > { %2094 = shalt.err (!%p2091_p9)
}
  0xe7   : > { %s2716_s4 = smov 4   ;;  %s2717_s3 = smov 64  }
  0xe8   : > { %1749 = dma.hbm_to_vmem [thread:$0]  (!%p2481_p11), %s2521_s10, 128, %s2515_s20, %s2525_s0, %s2717_s3, %s2717_s3, %s2716_s4  }
  0xe9   : > { %p2718_p8 = scmp.ne.s32.totalorder %s2702_s12, 0 }
  0xea   : > { %s2557_s9 = sand.u32 (!%p2718_p8), 1, %s2173_s28  }
  0xeb   : > { %369 = sbr.rel (%p2718_p8) target bundleno = 1295 (0x50f), region = 52  ;;  %s1471_s22 = sshll.u32 (!%p2718_p8), %s2557_s9, 2 }
  0xec   : > { %s372_s19 = scalar_lea.sflag (!%p2718_p8), [#allocation3], %s2557_s9  ;;  %s2561_s17 = scalar_lea.vmem (!%p2718_p8), [#allocation2], %s1471_s22 }
  0xf2   : > { %2140 = dma.done.wait (%p2453_p6), %s372_s19, 64  }
  0xf3   : > { %2142 = vsyncadd (%p2453_p6), %s372_s19, 4294967232  ;;  %s380_s0 = sand.u32 1, %s2264_s11   ;;  %s1472_s12 = sshll.u32 %s2557_s9, 3 }
  0xf4   : > { %s381_s2 = scalar_lea.sflag [#allocation6], %s380_s0  ;;  %s2571_s20 = scalar_lea.vmem [#allocation5], %s1472_s12 }
  0xf5   : > { %2144 = dma.done.wait (%p2453_p6), %s381_s2, 128  }
  0xf6   : > { %2146 = vsyncadd (%p2453_p6), %s381_s2, 4294967168  ;;  %p2719_p11 = scmp.eq.s32.totalorder %s2264_s11, 0 }
  0xf8   : > { %2148 = dma.done.wait (%p2719_p11), [#allocation6], 512   ;;  %p2720_p3 = pmov %p2719_p11 }
  0xfa   : > { %2150 = vsyncadd (%p2720_p3), [#allocation6], 4294966784  ;;  %p2721_p12 = pmov %p2720_p3 }
  0xfb   : > { %p2722_p1 = pmov %p2720_p3 }
  0xfc   : > { %2152 = dma.done.wait (%p2721_p12), [#allocation9], 640  }
  0xfd   : > { %2154 = vsyncadd (%p2722_p1), [#allocation9], 4294966656  ;;  %p2723_p13 = pmov %p2722_p1 }
  0xfe   : > { %p2724_p0 = pmov %p2722_p1 }
  0xff   : > { %2156 = dma.done.wait (%p2723_p13), [#allocation12], 5888  }
 0x100   : > { %2158 = vsyncadd (%p2724_p0), [#allocation12], 4294961408  ;;  %p2725_p6 = pmov %p2724_p0 }
 0x101   : > { %p2726_p2 = pmov %p2724_p0 }
 0x102   : > { %2160 = dma.done.wait (%p2725_p6), [#allocation15], 32  }
 0x103   : > { %2162 = vsyncadd (%p2726_p2), [#allocation15], 4294967264  ;;  %v2193_v0 = vmov 0.0   ;;  %vm2194_vm0 = vmmov 0   ;;  %v1812_v1 = vld [vmem:[#allocation8] sm:$0xff]   ;;  %v1813_v2 = vld [vmem:[#allocation8 + $0x8] sm:$0xff]  }
 0x104   : > { %1634 = vmatprep.subr.bf16.mxu1 %v2193_v0  ;;  %1642 = vmatprep.mubr.msk.bf16.mxu1 %vm2194_vm0, %v2193_v0  ;;  %v1815_v3 = vld [vmem:[#allocation8 + $0x18] sm:$0x3f]   ;;  %vm566_vm1 = vcmask 1045504   ;;  %v1817_v4 = vld [vmem:[#allocation7] sm:$0xff]   ;;  %v1814_v5 = vld [vmem:[#allocation8 + $0x10] sm:$0xff]   ;;  %vm562_vm2 = vcmask 490496  }
 0x105   : > { %1622 = vmatprep.subr.bf16.mxu0 %v2193_v0  ;;  %1630 = vmatprep.mubr.msk.bf16.mxu0 %vm2194_vm0, %v2193_v0  ;;  %v568_v6 = vsel %vm566_vm1, %v1815_v3, 0  ;;  %v1818_v7 = vld [vmem:[#allocation7 + $0x8] sm:$0xff]   ;;  %v1819_v8 = vld [vmem:[#allocation7 + $0x10] sm:$0xff]   ;;  %v1820_v10 = vld [vmem:[#allocation7 + $0x18] sm:$0xff]   ;;  %vm482_vm3 = vcmask 523264   ;;  %vm617_vm4 = vcmask 1046528  }
 0x106   : > { %1635 = vmatpush3.bf16.msra.mxu1 %v1812_v1  ;;  %1623 = vmatpush3.bf16.msra.mxu0 %v1817_v4  ;;  %v1816_v9 = vld [vmem:[%s2571_s20] sm:$0xff]   ;;  %v447_v11 = vld [vmem:[%s2561_s17] sm:$0xf]  ;;  %vm618_vm5 = vcmask 1047552   ;;  %v2195_v12 = vmov 65535   ;;  %vm613_vm6 = vcmask 121856  }
 0x107   : > { %1636 = vmatprep.subr.bf16.mxu1 %v2193_v0  ;;  %1624 = vmatprep.subr.bf16.mxu0 %v2193_v0  ;;  %v619_v13 = vsel %vm617_vm4, 4294967295, %v2195_v12  ;;  %v665_v21 = vld [vmem:[#allocation10 + $0x4] sm:$0xf]  ;;  %v612_v22 = vld [vmem:[#allocation10] sm:$0xf]  ;;  %v1821_v23 = vld [vmem:[#allocation11 + $0x40] sm:$0xff]  }
 0x108   : > { %v620_v17 = vsel %vm618_vm5, %v619_v13, 0  ;;  %v1822_v24 = vld [vmem:[#allocation11] sm:$0xff]   ;;  %v1824_v27 = vld [vmem:[#allocation11 + $0x48] sm:$0xff]   ;;  %v1828_v36 = vld [vmem:[#allocation11 + $0x50] sm:$0xff]   ;;  %s2196_s16 = smov 64   ;;  %vm1155_vm7 = vcmask 916480  }
 0x109   : > { %v1823_v25 = vld [vmem:[#allocation11 + $0xc0] sm:$0xff]   ;;  %v1827_v30 = vld [vmem:[#allocation11 + $0xc8] sm:$0xff]   ;;  %v1831_v37 = vld [vmem:[#allocation11 + $0xd0] sm:$0xff]   ;;  %s1544_s10 = sshll.u32 %s2264_s11, 7  ;;  %s445_s21 = scalar_lea.vmem [#allocation16], %s1472_s12  ;;  %vm1290_vm8 = vcmask 783360  }
 0x10a   : > { %1637 = vmatpush3.bf16.msra.mxu1 %v1813_v2  ;;  %1625 = vmatpush3.bf16.msra.mxu0 %v1818_v7  ;;  %v1825_v28 = vld [vmem:[#allocation11 + $0x80] sm:$0xff]   ;;  %v1826_v32 = vld [vmem:[#allocation11 + $0x8] sm:$0xff]   ;;  %v1830_v38 = vld [vmem:[#allocation11 + $0x10] sm:$0xff]   ;;  %s1306_s14 = sshll.u32 %s445_s21, 4  ;;  %s2640_s13 = scalar_lea.hbm %s2692_s8, %s1544_s10  ;;  %s2642_s14 = int_to_ptr.vmem [resolvable:$true] %s1306_s14 }
 0x10b   : > { %1638 = vmatprep.subr.bf16.mxu1 %v2193_v0  ;;  %1626 = vmatprep.subr.bf16.mxu0 %v2193_v0  ;;  %v1829_v33 = vld [vmem:[#allocation11 + $0x88] sm:$0xff]   ;;  %v1833_v39 = vld [vmem:[#allocation11 + $0x90] sm:$0xff]   ;;  %v1832_v40 = vld [vmem:[#allocation11 + $0x58] sm:$0xff]   ;;  %s1293_s4 = scalar_lea.sflag [#allocation4], %s2557_s9  ;;  %s2095_s11 = scalar_lea.vmem %s2642_s14, 128 }
 0x10c   : > { %v1835_v41 = vld [vmem:[#allocation11 + $0xd8] sm:$0xff]   ;;  %v1836_v44 = vld [vmem:[#allocation11 + $0x60] sm:$0xff]   ;;  %v1840_v48 = vld [vmem:[#allocation11 + $0x68] sm:$0xff]   ;;  %p2096_p4 = scmp.ne.s32.totalorder %s2642_s14, %s2095_s11  ;;  %p2727_p10 = scmp.ne.s32.totalorder %s2711_s24, 0 }
 0x10d   : > { %v1834_v42 = vld [vmem:[#allocation11 + $0x18] sm:$0xff]   ;;  %v1839_v45 = vld [vmem:[#allocation11 + $0xe0] sm:$0xff]   ;;  %v1843_v49 = vld [vmem:[#allocation11 + $0xe8] sm:$0xff]   ;;  %s2197_s3 = smov [#allocation16]  }
 0x10e   : > { %1639 = vmatpush3.bf16.msra.mxu1 %v1814_v5  ;;  %1627 = vmatpush3.bf16.msra.mxu0 %v1819_v8  ;;  %v1837_v43 = vld [vmem:[#allocation11 + $0x98] sm:$0xff]   ;;  %v1838_v46 = vld [vmem:[#allocation11 + $0x20] sm:$0xff]   ;;  %v1842_v50 = vld [vmem:[#allocation11 + $0x28] sm:$0xff]   ;;  %p2097_p5 = pnand %p2096_p4, %p2727_p10  ;;  %s2099_s22 = sshll.u32 %s2197_s3, 4  ;;  %s2100_s22 = int_to_ptr.vmem [resolvable:$false] %s2099_s22 }
 0x10f   : > { %1640 = vmatprep.subr.bf16.mxu1 %v2193_v0  ;;  %1628 = vmatprep.subr.bf16.mxu0 %v2193_v0  ;;  %v1841_v47 = vld [vmem:[#allocation11 + $0xa0] sm:$0xff]   ;;  %v1845_v51 = vld [vmem:[#allocation11 + $0xa8] sm:$0xff]   ;;  %v1844_v52 = vld [vmem:[#allocation11 + $0x70] sm:$0xff]   ;;  %s2101_s19 = scalar_lea.vmem %s2100_s22, 256  ;;  %p2102_p9 = scmp.lt.s32.totalorder %s2642_s14, %s2100_s22 }
 0x110   : > { %v1846_v53 = vld [vmem:[#allocation11 + $0x30] sm:$0xff]   ;;  %v1848_v58 = vld [vmem:[#allocation11 + $0x78] sm:$0xff]   ;;  %p2098_p7 = pneg %p2097_p5  ;;  %p2103_p8 = scmp.lt.s32.totalorder %s2101_s19, %s2095_s11 }
 0x111   : > { %v1850_v59 = vld [vmem:[#allocation11 + $0x38] sm:$0xff]   ;;  %v1847_v60 = vld [vmem:[#allocation11 + $0xf0] sm:$0xff]  }
 0x112   : > { %1641 = vmatpush3.bf16.msra.mxu1 %v568_v6  ;;  %1629 = vmatpush3.bf16.msra.mxu0 %v1820_v10  ;;  %v1849_v61 = vld [vmem:[#allocation11 + $0xb0] sm:$0xff]   ;;  %v1851_v62 = vld [vmem:[#allocation11 + $0xf8] sm:$0xff]   ;;  %p2104_p11 = por %p2103_p8, %p2102_p9 }
 0x113   : > { %1652 = vmatprep.subr.bf16.mxu1 %v2193_v0  ;;  %1646 = vmatprep.subr.bf16.mxu0 %v2193_v0  ;;  %v1852_v63 = vld [vmem:[#allocation11 + $0xb8] sm:$0xff]  }
 0x114   : > { %p2105_p3 = pnand %p2104_p11, %p2098_p7 }
 0x115   : > { %1643 = vmatmul.mubr.msk.bf16.vlgmr.msra.gmra.mrb[0].mxu1 %vm562_vm2, %v1816_v9  ;;  %1631 = vmatmul.mubr.msk.bf16.vlgmr.msra.gmra.mrb[0].mxu0 %vm482_vm3, %v447_v11  ;;  %v1853_v11 = vld [vmem:[#allocation13] sm:$0xff]  }
 0x116   : > { %1654 = vmatprep.mubr.msk.bf16.mxu1 %vm2194_vm0, %v2193_v0  ;;  %1648 = vmatprep.mubr.msk.bf16.mxu0 %vm2194_vm0, %v2193_v0 }
 0x1e8   : > { %v604_v14 = vpop.f32.mrb[0].mxu1  ;;  %v520_v26 = vpop.f32.mrb[0].mxu0 }
 0x1e9   : > { %v1644_v15 = vpop.f32.mrb[1].mxu1  ;;  %v1632_v29 = vpop.f32.mrb[1].mxu0  ;;  %v715_v34 = vpack.c.bf16 %v520_v26, %v520_v26  ;;  %v1863_v26 = vld [vmem:[#allocation13 + $0x58] sm:$0xff]  }
 0x1ea   : > { %v607_v16 = vpop.f32.mrb[2].mxu1  ;;  %v523_v31 = vpop.f32.mrb[2].mxu0  ;;  %v1866_v29 = vld [vmem:[#allocation13 + $0x68] sm:$0xff]  }
 0x1eb   : > { %v611_v18 = vpack.c.bf16 %v607_v16, %v604_v14  ;;  %v1645_v19 = vpop.f32.mrb[3].mxu1  ;;  %v1633_v35 = vpop.f32.mrb[3].mxu0  ;;  %v791_v54 = vshll.u32 %v715_v34, 16  ;;  %v789_v55 = vshrl.u32 %v715_v34, 16  ;;  %v1854_v14 = vld [vmem:[#allocation13 + $0x8] sm:$0xff]  }
 0x1ec   : > { %v1856_v19 = vld [vmem:[#allocation13 + $0x10] sm:$0xff]  }
 0x1ed   : > { %v622_v20 = vand.u32 %v620_v17, %v611_v18  ;;  %v793_v56 = vrot.slane %v791_v54, 1  ;;  %v1855_v17 = vld [vmem:[#allocation13 + $0x38] sm:$0xff]  }
 0x1ef   : > { %1647 = vmatpush3.bf16.msra.mxu0 %v622_v20  ;;  %1653 = vmatpush3.bf16.msra.mxu1 %v622_v20  ;;  %v794_v57 = vor.u32 %v793_v56, %v789_v55  ;;  %v1857_v20 = vld [vmem:[#allocation13 + $0x40] sm:$0xff]  }
 0x1f0   : > { %1584 = vmatprep.subr.bf16.mxu1 %v1821_v23  ;;  %1562 = vmatprep.subr.bf16.mxu0 %v1823_v25  ;;  %v1860_v23 = vld [vmem:[#allocation13 + $0x20] sm:$0xff]   ;;  %v1862_v25 = vld [vmem:[#allocation13 + $0x28] sm:$0xff]  }
 0x1f2   : > { %1655 = vmatmul.mubr.msk.bf16.vlgmr.msra.gmra.mrb[4].mxu1 %vm613_vm6, %v665_v21  ;;  %1649 = vmatmul.mubr.msk.bf16.vlgmr.msra.gmra.mrb[4].mxu0 %vm613_vm6, %v612_v22  ;;  %v1858_v21 = vld [vmem:[#allocation13 + $0x18] sm:$0xff]   ;;  %v1859_v22 = vld [vmem:[#allocation13 + $0x48] sm:$0xff]  }
 0x1f3   : > { %1585 = vmatpush3.bf16.msra.mxu1 %v1822_v24  ;;  %1563 = vmatpush3.bf16.msra.mxu0 %v1825_v28  ;;  %v1861_v24 = vld [vmem:[#allocation13 + $0x50] sm:$0xff]   ;;  %v1865_v28 = vld [vmem:[#allocation13 + $0x60] sm:$0xff]  }
 0x1f4   : > { %1586 = vmatprep.subr.bf16.mxu1 %v1824_v27  ;;  %1564 = vmatprep.subr.bf16.mxu0 %v1827_v30  ;;  %v1864_v27 = vld [vmem:[#allocation13 + $0x30] sm:$0xff]  }
 0x1f5   : > { %1061 = vmatprep.mubr.bf16.mxu1 %v715_v34  ;;  %925 = vmatprep.mubr.bf16.mxu0 %v794_v57 }
 0x1f7   : > { %1587 = vmatpush3.bf16.msra.mxu1 %v1826_v32  ;;  %1565 = vmatpush3.bf16.msra.mxu0 %v1829_v33 }
 0x1f8   : > { %1588 = vmatprep.subr.bf16.mxu1 %v1828_v36  ;;  %1566 = vmatprep.subr.bf16.mxu0 %v1831_v37 }
 0x1fb   : > { %1589 = vmatpush3.bf16.msra.mxu1 %v1830_v38  ;;  %1567 = vmatpush3.bf16.msra.mxu0 %v1833_v39  ;;  %v1525_v39 = vld [vmem:[#allocation14] ss:$0 sm:$0xff] }
 0x1fc   : > { %1590 = vmatprep.subr.bf16.mxu1 %v1832_v40  ;;  %1568 = vmatprep.subr.bf16.mxu0 %v1835_v41 }
 0x1ff   : > { %1591 = vmatpush3.bf16.msra.mxu1 %v1834_v42  ;;  %1569 = vmatpush3.bf16.msra.mxu0 %v1837_v43 }
 0x200   : > { %1592 = vmatprep.subr.bf16.mxu1 %v1836_v44  ;;  %1570 = vmatprep.subr.bf16.mxu0 %v1839_v45 }
 0x203   : > { %1593 = vmatpush3.bf16.msra.mxu1 %v1838_v46  ;;  %1571 = vmatpush3.bf16.msra.mxu0 %v1841_v47 }
 0x204   : > { %1594 = vmatprep.subr.bf16.mxu1 %v1840_v48  ;;  %1572 = vmatprep.subr.bf16.mxu0 %v1843_v49 }
 0x207   : > { %1595 = vmatpush3.bf16.msra.mxu1 %v1842_v50  ;;  %1573 = vmatpush3.bf16.msra.mxu0 %v1845_v51 }
 0x208   : > { %1596 = vmatprep.subr.bf16.mxu1 %v1844_v52  ;;  %1574 = vmatprep.subr.bf16.mxu0 %v1847_v60 }
 0x20b   : > { %1597 = vmatpush3.bf16.msra.mxu1 %v1846_v53  ;;  %1575 = vmatpush3.bf16.msra.mxu0 %v1849_v61  ;;  %v1542_v53 = vld [vmem:[#allocation14 + $0x1] ss:$0 sm:$0xff] }
 0x20c   : > { %1598 = vmatprep.subr.bf16.mxu1 %v1848_v58  ;;  %1576 = vmatprep.subr.bf16.mxu0 %v1851_v62 }
 0x20f   : > { %1599 = vmatpush3.bf16.msra.mxu1 %v1850_v59  ;;  %1577 = vmatpush3.bf16.msra.mxu0 %v1852_v63 }
 0x210   : > { %1676 = vmatprep.subr.bf16.mxu1 %v2193_v0  ;;  %1658 = vmatprep.subr.bf16.mxu0 %v2193_v0 }
 0x2c5   : > { %v703_v1 = vpop.f32.mrb[4].mxu1  ;;  %v658_v2 = vpop.f32.mrb[4].mxu0 }
 0x2c6   : > { %710 = vrot.lane.b32.xlu0 %v703_v1, %s2196_s16  ;;  %v1656_v3 = vpop.f32.mrb[5].mxu1  ;;  %v1650_v4 = vpop.f32.mrb[5].mxu0 }
 0x2c7   : > { %v706_v5 = vpop.f32.mrb[6].mxu1  ;;  %v661_v6 = vpop.f32.mrb[6].mxu0 }
 0x2c8   : > { %v1657_v7 = vpop.f32.mrb[7].mxu1  ;;  %v1651_v8 = vpop.f32.mrb[7].mxu0 }
 0x338   : > { %v711_v9 = vpop.permute.xlu0 %710 }
 0x339   : > { %v713_v10 = vsel %vm482_vm3, %v658_v2, %v711_v9 }
 0x33a   : > { %v714_v12 = vpack.c.bf16 %v713_v10, %v713_v10 }
 0x33c   : > { %v784_v13 = vshll.u32 %v714_v12, 16  ;;  %1062 = vmatmul.mubr.bf16.vlgmr.msra.gmra.mrb[8].mxu1 %v714_v12  ;;  %v782_v15 = vshrl.u32 %v714_v12, 16 }
 0x33d   : > { %1677 = vmatpush3.bf16.msra.mxu1 %v1853_v11  ;;  %1690 = vmatprep.mubr.msk.bf16.mxu1 %vm2194_vm0, %v2193_v0 }
 0x33e   : > { %v786_v16 = vrot.slane %v784_v13, 1  ;;  %1678 = vmatprep.subr.bf16.mxu1 %v2193_v0 }
 0x340   : > { %v787_v18 = vor.u32 %v786_v16, %v782_v15 }
 0x341   : > { %1679 = vmatpush3.bf16.msra.mxu1 %v1854_v14 }
 0x342   : > { %926 = vmatmul.mubr.bf16.vlgmr.msra.gmra.mrb[8].mxu0 %v787_v18  ;;  %1680 = vmatprep.subr.bf16.mxu1 %v2193_v0 }
 0x343   : > { %1659 = vmatpush3.bf16.msra.mxu0 %v1855_v17  ;;  %1672 = vmatprep.mubr.msk.bf16.mxu0 %vm2194_vm0, %v2193_v0 }
 0x344   : > { %1660 = vmatprep.subr.bf16.mxu0 %v2193_v0 }
 0x345   : > { %1681 = vmatpush3.bf16.msra.mxu1 %v1856_v19 }
 0x346   : > { %1682 = vmatprep.subr.bf16.mxu1 %v2193_v0 }
 0x347   : > { %1661 = vmatpush3.bf16.msra.mxu0 %v1857_v20 }
 0x348   : > { %1662 = vmatprep.subr.bf16.mxu0 %v2193_v0 }
 0x349   : > { %1683 = vmatpush3.bf16.msra.mxu1 %v1858_v21 }
 0x34a   : > { %1684 = vmatprep.subr.bf16.mxu1 %v2193_v0 }
 0x34b   : > { %1663 = vmatpush3.bf16.msra.mxu0 %v1859_v22 }
 0x34c   : > { %1664 = vmatprep.subr.bf16.mxu0 %v2193_v0 }
 0x34d   : > { %1685 = vmatpush3.bf16.msra.mxu1 %v1860_v23 }
 0x34e   : > { %1686 = vmatprep.subr.bf16.mxu1 %v2193_v0 }
 0x34f   : > { %1665 = vmatpush3.bf16.msra.mxu0 %v1861_v24 }
 0x350   : > { %1666 = vmatprep.subr.bf16.mxu0 %v2193_v0 }
 0x351   : > { %1687 = vmatpush3.bf16.msra.mxu1 %v1862_v25 }
 0x352   : > { %1688 = vmatprep.subr.bf16.mxu1 %v2193_v0 }
 0x353   : > { %1667 = vmatpush3.bf16.msra.mxu0 %v1863_v26 }
 0x354   : > { %1668 = vmatprep.subr.bf16.mxu0 %v2193_v0 }
 0x355   : > { %1689 = vmatpush3.bf16.msra.mxu1 %v1864_v27 }
 0x357   : > { %1669 = vmatpush3.bf16.msra.mxu0 %v1865_v28 }
 0x358   : > { %1670 = vmatprep.subr.bf16.mxu0 %v2193_v0 }
 0x35b   : > { %1671 = vmatpush3.bf16.msra.mxu0 %v1866_v29 }
 0x40f   : > { %v1600_v30 = vpop.f32.mrb[8].mxu1 }
 0x410   : > { %v1601_v31 = vpop.f32.mrb[9].mxu1 }
 0x411   : > { %v1602_v32 = vadd.f32 %v1601_v31, %v1600_v30  ;;  %v1603_v33 = vpop.f32.mrb[10].mxu1 }
 0x412   : > { %v1604_v34 = vpop.f32.mrb[11].mxu1 }
 0x415   : > { %v1578_v35 = vpop.f32.mrb[8].mxu0 }
 0x416   : > { %v1579_v36 = vpop.f32.mrb[9].mxu0 }
 0x417   : > { %v1580_v37 = vadd.f32 %v1579_v36, %v1578_v35  ;;  %v1581_v38 = vpop.f32.mrb[10].mxu0 }
 0x418   : > { %v1582_v40 = vpop.f32.mrb[11].mxu0 }
 0x419   : > { %v1064_v41 = vadd.f32 %v1602_v32, %v1580_v37 }
 0x41b   : > { %v1074_v42 = vadd.f32 %v1525_v39, %v1064_v41 }
 0x41d   : > { %v1075_v43 = vmax.f32 %v1074_v42, 0.0 }
 0x41f   : > { %v1076_v44 = vpack.c.bf16 %v1075_v43, %v1075_v43 }
 0x421   : > { %v1109_v0 = vshll.u32 %v1076_v44, 16  ;;  %1691 = vmatmul.mubr.msk.bf16.vlgmr.msra.gmra.mrb[12].mxu1 %vm1155_vm7, %v1076_v44  ;;  %v1107_v45 = vshrl.u32 %v1076_v44, 16 }
 0x423   : > { %v1111_v46 = vrot.slane %v1109_v0, 1 }
 0x425   : > { %v1112_v47 = vor.u32 %v1111_v46, %v1107_v45 }
 0x427   : > { %1673 = vmatmul.mubr.msk.bf16.vlgmr.msra.gmra.mrb[12].mxu0 %vm1155_vm7, %v1112_v47 }
 0x4f4   : > { %v1277_v48 = vpop.f32.mrb[12].mxu1 }
 0x4f5   : > { %v1692_v49 = vpop.f32.mrb[13].mxu1 }
 0x4f6   : > { %v1280_v50 = vpop.f32.mrb[14].mxu1 }
 0x4f7   : > { %v1693_v51 = vpop.f32.mrb[15].mxu1 }
 0x4fa   : > { %v1193_v52 = vpop.f32.mrb[12].mxu0 }
 0x4fb   : > { %v1278_v54 = vadd.f32 %v1277_v48, %v1193_v52  ;;  %v1674_v55 = vpop.f32.mrb[13].mxu0 }
 0x4fc   : > { %v1196_v56 = vpop.f32.mrb[14].mxu0 }
 0x4fd   : > { %v1288_v57 = vadd.f32 %v1542_v53, %v1278_v54  ;;  %v1675_v58 = vpop.f32.mrb[15].mxu0 }
 0x4ff   : > { %v1289_v59 = vmax.f32 %v1288_v57, 0.0 }
 0x501   : > { %1291 = vst.msk [vmem:[%s445_s21] sm:$0x3f] %vm1290_vm8, %v1289_v59 }
 0x502   : > { %2108 = shalt.err (!%p2105_p3)
}
 0x503   : > { %s2109_s9 = scalar_lea.hbm %s2640_s13, 128  ;;  %s2113_s12 = scalar_lea.hbm %s2692_s8, 256 }
 0x504   : > { %p2110_p12 = scmp.ne.s32.totalorder %s2640_s13, %s2109_s9  ;;  %p2114_p0 = scmp.lt.u32.totalorder %s2640_s13, %s2692_s8 }
 0x505   : > { %p2115_p6 = scmp.lt.u32.totalorder %s2113_s12, %s2109_s9  ;;  %p2117_p4 = scmp.lt.u32.totalorder %s2109_s9, %s2640_s13 }
 0x506   : > { %p2111_p1 = pnand %p2110_p12, %p2727_p10 }
 0x507   : > { %p2116_p2 = por %p2115_p6, %p2114_p0 }
 0x508   : > { %p2112_p13 = pneg %p2111_p1 }
 0x509   : > { %p2118_p5 = por %p2117_p4, %p2116_p2 }
 0x50b   : > { %p2119_p7 = pnand %p2118_p5, %p2112_p13 }
 0x50d   : > { %2122 = shalt.err (!%p2119_p7)
}
 0x50e   : > { %1722 = dma.vmem_to_hbm [thread:$0]  (%p2727_p10), %s2642_s14, 128, %s2640_s13, %s1293_s4  }
 0x50f PF: > { %s1318_s16 = sand.u32 1, %s2169_s27   ;;  %p2728_p9 = scmp.ne.s32.totalorder %s2712_s25, 0 }
 0x510   : > { %p2729_p8 = scmp.ge.s32.totalorder %s2181_s30, 2  ;;  %s1319_s10 = scalar_lea.sflag [#allocation4], %s1318_s16 }
 0x512   : > { %p1751_p11 = pnand %p2729_p8, %p2728_p9 }
 0x514   : > { %2164 = dma.done.wait (!%p1751_p11), %s1319_s10, 128  }
 0x515   : > { %2166 = vsyncadd (!%p1751_p11), %s1319_s10, 4294967168  ;;  %p27_p3 = scmp.ge.s32.totalorder %s2434_s15, 4   ;;  %s2730_s27 = smov %s2173_s28 }
 0x516   : > { %s2731_s28 = smov %s2177_s29  ;;  %s2732_s29 = smov %s2445_s18 }
 0x517   : > { %s2733_s30 = smov %s2434_s15  ;;  %29 = sbr.rel (!%p27_p3) target bundleno = 15 (0xf), region = 137 }
 0x51e   :  { %1324 = vsyncpa [#allocation3], 1 }
 0x51f   :  { %1326 = vsyncpa [#allocation3 + $0x1], 1 }
 0x520   :  { %1327 = vsyncpa [#allocation6], 1 }
 0x521   :  { %1329 = vsyncpa [#allocation6 + $0x1], 1 }
 0x522   :  { %1330 = vsyncpa [#allocation9], 1 }
 0x523   :  { %1331 = vsyncpa [#allocation12], 1 }
 0x524   :  { %1332 = vsyncpa [#allocation15], 1 }
 0x525   :  { %1333 = vsyncpa [#allocation4], 1 }
 0x526   :  { %1335 = vsyncpa [#allocation4 + $0x1], 1 }

</bundles_post_ra>
